<compile_context>
chip_gen: v6e
topology: v6e:2x2x1
jax: 0.10.0
libtpu: 0.0.40
codegen_flags: <defaults>
</compile_context>

<pallas_src>
import math

import jax
import jax.numpy as jnp
from jax.experimental import pallas as pl
from jax.experimental.pallas import tpu as pltpu


def _gcn_kernel(x_ref, adj_ref, w_ref, b_ref, o_ref):
    # x_ref:   (M, F_in)     all batches' node features stacked row-wise (M = B*C)
    # adj_ref: (B, C, C)     per-batch adjacency
    # w_ref:   (F_in, F_out) shared weight
    # b_ref:   (1, F_out)    shared bias
    # o_ref:   (M, F_out)    output
    B, C, _ = adj_ref.shape

    # One MXU matmul for the whole batch (M = B*C sublanes).
    support = jnp.dot(x_ref[...], w_ref[...], preferred_element_type=jnp.float32)

    bias = b_ref[...]  # (1, F_out), broadcasts over rows

    # Per-batch combine: out[b] = adj[b] @ support[b] + bias.
    # B is a tiny static constant, so this unrolls to B small MXU matmuls
    # (the MXU's vector-extended slot is otherwise idle here).
    for b in range(B):
        blk = support[b * C:(b + 1) * C, :]                       # (C, F_out)
        out_b = jnp.dot(adj_ref[b], blk,
                        preferred_element_type=jnp.float32) + bias
        o_ref[b * C:(b + 1) * C, :] = out_b.astype(o_ref.dtype)


def graph_convolution(x, adj, weight, bias):
    """x: (B, C, H, W) f32, adj: (B, C, C), weight: (F_in, F_out),
    bias: (1, F_out).  Returns (B*C, F_out), matching the PyTorch forward."""
    B, C, H, W = x.shape
    F_in = H * W
    F_out = weight.shape[1]
    assert weight.shape[0] == F_in, "in_features must equal H*W"

    M = B * C
    x2 = x.reshape(M, F_in)  # contiguous reshape (free under XLA)

    itemsize = jnp.dtype(x.dtype).itemsize
    cost = pl.CostEstimate(
        flops=2 * M * F_in * F_out + 2 * B * C * C * F_out,
        transcendentals=0,
        bytes_accessed=itemsize * (x2.size + adj.size + weight.size
                                   + bias.size + M * F_out),
    )

    vmem = pl.BlockSpec(memory_space=pltpu.MemorySpace.VMEM)
    return pl.pallas_call(
        _gcn_kernel,
        out_shape=jax.ShapeDtypeStruct((M, F_out), x.dtype),
        in_specs=[vmem, vmem, vmem, vmem],
        out_specs=vmem,
        cost_estimate=cost,
    )(x2, adj, weight, bias)


def init_params(key, in_features, out_features, gain=1.414):
    """Deterministic xavier_uniform_ weight init + zero bias (matches __init__).
    Bias is pre-shaped (1, out_features) so no per-call reshape is needed."""
    bound = gain * math.sqrt(6.0 / (in_features + out_features))
    weight = jax.random.uniform(
        key, (in_features, out_features), dtype=jnp.float32,
        minval=-bound, maxval=bound)
    bias = jnp.zeros((1, out_features), dtype=jnp.float32)
    return weight, bias


def reference(x, adj, weight, bias):
    B, C, H, W = x.shape
    xf = x.reshape(B * C, H * W)
    support = xf @ weight
    support = support.reshape(B, C, -1)
    out = jnp.einsum("bij,bjk->bik", adj, support)
    out = out.reshape(B * C, -1) + bias
    return out


if __name__ == "__main__":
    B, C, H, W = 2, 4, 16, 16          # in_features = H*W = 256
    F_out = 32

    key = jax.random.PRNGKey(0)
    kx, kadj, kw = jax.random.split(key, 3)

    x = jax.random.normal(kx, (B, C, H, W), dtype=jnp.float32)
    adj = jax.random.normal(kadj, (B, C, C), dtype=jnp.float32)
    weight, bias = init_params(kw, H * W, F_out)

    gcn = jax.jit(graph_convolution)
    out = jax.block_until_ready(gcn(x, adj, weight, bias))

    ref = reference(x, adj, weight, bias)
    assert out.shape == (B * C, F_out)
    assert jnp.allclose(out, ref, atol=1e-4, rtol=1e-4), "mismatch vs reference"

    print("KERNEL_OK")
</pallas_src>

<mosaic_0001>
module attributes {stable_mosaic.version = 11 : i64} {
  func.func @_gcn_kernel(%arg0: memref<8x256xf32, #tpu.memory_space<vmem>>, %arg1: memref<2x4x4xf32, #tpu.memory_space<vmem>>, %arg2: memref<256x32xf32, #tpu.memory_space<vmem>>, %arg3: memref<1x32xf32, #tpu.memory_space<vmem>>, %arg4: memref<8x32xf32, #tpu.memory_space<vmem>>) attributes {dimension_semantics = [], scalar_prefetch = 0 : i64, scratch_operands = 0 : i64, tpu.core_type = #tpu.core_type<tc>} {
    %c0 = arith.constant 0 : index
    %c0_0 = arith.constant 0 : index
    %0 = vector.load %arg0[%c0, %c0_0] : memref<8x256xf32, #tpu.memory_space<vmem>>, vector<8x256xf32>
    %c0_1 = arith.constant 0 : index
    %c0_2 = arith.constant 0 : index
    %1 = vector.load %arg2[%c0_1, %c0_2] : memref<256x32xf32, #tpu.memory_space<vmem>>, vector<256x32xf32>
    %cst = arith.constant dense<0.000000e+00> : vector<8x32xf32>
    %2 = tpu.matmul %0, %1, %cst {dimension_numbers = #tpu.dot_dimension_numbers<[1], [0], [0], [1], [0, 0, 1, 1], [], []>} : vector<8x256xf32>, vector<256x32xf32>, vector<8x32xf32> -> vector<8x32xf32>
    %c0_3 = arith.constant 0 : index
    %c0_4 = arith.constant 0 : index
    %3 = vector.load %arg3[%c0_3, %c0_4] : memref<1x32xf32, #tpu.memory_space<vmem>>, vector<1x32xf32>
    %4 = vector.extract_strided_slice %2 {offsets = [0, 0], sizes = [4, 32], strides = [1, 1]} : vector<8x32xf32> to vector<4x32xf32>
    %c0_5 = arith.constant 0 : index
    %c0_6 = arith.constant 0 : index
    %c0_7 = arith.constant 0 : index
    %5 = vector.load %arg1[%c0_5, %c0_6, %c0_7] : memref<2x4x4xf32, #tpu.memory_space<vmem>>, vector<1x4x4xf32>
    %6 = vector.shape_cast %5 : vector<1x4x4xf32> to vector<4x4xf32>
    %cst_8 = arith.constant dense<0.000000e+00> : vector<4x32xf32>
    %7 = tpu.matmul %6, %4, %cst_8 {dimension_numbers = #tpu.dot_dimension_numbers<[1], [0], [0], [1], [0, 0, 1, 1], [], []>} : vector<4x4xf32>, vector<4x32xf32>, vector<4x32xf32> -> vector<4x32xf32>
    %8 = vector.broadcast %3 : vector<1x32xf32> to vector<4x32xf32>
    %9 = arith.addf %7, %8 : vector<4x32xf32>
    %c0_9 = arith.constant 0 : index
    %c0_10 = arith.constant 0 : index
    %10 = vector.load %arg4[%c0_9, %c0_10] : memref<8x32xf32, #tpu.memory_space<vmem>>, vector<4x32xf32>
    tpu.vector_store %arg4[%c0_9, %c0_10], %9 {strides = array<i32>} : memref<8x32xf32, #tpu.memory_space<vmem>>, vector<4x32xf32>,
    %11 = vector.extract_strided_slice %2 {offsets = [4, 0], sizes = [4, 32], strides = [1, 1]} : vector<8x32xf32> to vector<4x32xf32>
    %c1 = arith.constant 1 : index
    %c0_11 = arith.constant 0 : index
    %c0_12 = arith.constant 0 : index
    %12 = vector.load %arg1[%c1, %c0_11, %c0_12] : memref<2x4x4xf32, #tpu.memory_space<vmem>>, vector<1x4x4xf32>
    %13 = vector.shape_cast %12 : vector<1x4x4xf32> to vector<4x4xf32>
    %cst_13 = arith.constant dense<0.000000e+00> : vector<4x32xf32>
    %14 = tpu.matmul %13, %11, %cst_13 {dimension_numbers = #tpu.dot_dimension_numbers<[1], [0], [0], [1], [0, 0, 1, 1], [], []>} : vector<4x4xf32>, vector<4x32xf32>, vector<4x32xf32> -> vector<4x32xf32>
    %15 = vector.broadcast %3 : vector<1x32xf32> to vector<4x32xf32>
    %16 = arith.addf %14, %15 : vector<4x32xf32>
    %c4 = arith.constant 4 : index
    %c0_14 = arith.constant 0 : index
    %17 = vector.load %arg4[%c4, %c0_14] : memref<8x32xf32, #tpu.memory_space<vmem>>, vector<4x32xf32>
    tpu.vector_store %arg4[%c4, %c0_14], %16 {strides = array<i32>} : memref<8x32xf32, #tpu.memory_space<vmem>>, vector<4x32xf32>,
    return
  }
}

</mosaic_0001>

<bundles_post_ra>
// kernel: graph_convolution.1
= control target key start
LH: loop header
LB: loop body
LE: loop exit
PB: predicated region body
PF: predicated region fallthrough
CT: control target
= control target key end

     0   :  { %s525_s0 = inlined_call_operand.vmem [shape: f32[8,256], index: 0, kind: input, shape index: {}]   ;;  %s526_s1 = inlined_call_operand.vmem [shape: f32[2,4,4], index: 1, kind: input, shape index: {}]   ;;  %s527_s2 = inlined_call_operand.vmem [shape: f32[256,32], index: 2, kind: input, shape index: {}]   ;;  %s528_s3 = inlined_call_operand.vmem [shape: f32[1,32], index: 3, kind: input, shape index: {}]   ;;  %s529_s4 = inlined_call_operand.hbm [shape: f32[8,32], index: 4, kind: output, shape index: {}]  }
   0x1   :  { %v51_v0 = vld [vmem:[%s527_s2 + $0xf8] sm:$0xff]  ;;  %v50_v2 = vld [vmem:[%s527_s2 + $0xf0] sm:$0xff]  ;;  %v49_v4 = vld [vmem:[%s527_s2 + $0xe8] sm:$0xff] }
   0x2   :  { %v35_v1 = vld [vmem:[%s527_s2 + $0x78] sm:$0xff]  ;;  %309 = vmatprep.subr.mxu0 %v51_v0  ;;  %v34_v3 = vld [vmem:[%s527_s2 + $0x70] sm:$0xff]  ;;  %v33_v5 = vld [vmem:[%s527_s2 + $0x68] sm:$0xff] }
   0x3   :  { %310 = vmatpush3.msra.mxu0 %v35_v1  ;;  %v48_v6 = vld [vmem:[%s527_s2 + $0xe0] sm:$0xff]  ;;  %v47_v8 = vld [vmem:[%s527_s2 + $0xd8] sm:$0xff]  ;;  %v46_v10 = vld [vmem:[%s527_s2 + $0xd0] sm:$0xff] }
   0x4   :  { %311 = vmatprep.subr.mxu0 %v50_v2  ;;  %v32_v7 = vld [vmem:[%s527_s2 + $0x60] sm:$0xff]  ;;  %v31_v9 = vld [vmem:[%s527_s2 + $0x58] sm:$0xff]  ;;  %v30_v11 = vld [vmem:[%s527_s2 + $0x50] sm:$0xff] }
   0x5   :  { %312 = vmatpush3.msra.mxu0 %v34_v3  ;;  %v45_v12 = vld [vmem:[%s527_s2 + $0xc8] sm:$0xff] }
   0x6   :  { %313 = vmatprep.subr.mxu0 %v49_v4  ;;  %v19_v13 = vld [vmem:[%s525_s0 + $0x8] sm:$0xff] }
   0x7   :  { %314 = vmatpush3.msra.mxu0 %v33_v5  ;;  %v29_v14 = vld [vmem:[%s527_s2 + $0x48] sm:$0xff]  ;;  %116 = vmatprep.mubr.f32.mxu0 %v19_v13 }
   0x8   :  { %315 = vmatprep.subr.mxu0 %v48_v6 }
   0x9   :  { %316 = vmatpush3.msra.mxu0 %v32_v7 }
   0xa   :  { %317 = vmatprep.subr.mxu0 %v47_v8 }
   0xb   :  { %318 = vmatpush3.msra.mxu0 %v31_v9 }
   0xc   :  { %319 = vmatprep.subr.mxu0 %v46_v10 }
   0xd   :  { %9 = vsyncpa [#allocation3], 0  ;;  %320 = vmatpush3.msra.mxu0 %v30_v11  ;;  %v44_v15 = vld [vmem:[%s527_s2 + $0xc0] sm:$0xff]  ;;  %v43_v17 = vld [vmem:[%s527_s2 + $0xb8] sm:$0xff]  ;;  %v383_v34 = vmov 0.0   ;;  %vm384_vm0 = vmmov 0  }
   0xe   :  { %321 = vmatprep.subr.mxu0 %v45_v12  ;;  %v28_v16 = vld [vmem:[%s527_s2 + $0x40] sm:$0xff]  ;;  %v27_v18 = vld [vmem:[%s527_s2 + $0x38] sm:$0xff]  ;;  %v42_v19 = vld [vmem:[%s527_s2 + $0xb0] sm:$0xff]  ;;  %348 = vmatprep.subr.mxu1 %v383_v34  ;;  %vm134_vm1 = vcmask 1043456   ;;  %vm130_vm2 = vcmask 31744   ;;  %vm208_vm3 = vcmask 257024  }
   0xf   :  { %322 = vmatpush3.msra.mxu0 %v29_v14  ;;  %v26_v20 = vld [vmem:[%s527_s2 + $0x30] sm:$0xff]  ;;  %v41_v21 = vld [vmem:[%s527_s2 + $0xa8] sm:$0xff]  ;;  %v40_v23 = vld [vmem:[%s527_s2 + $0xa0] sm:$0xff]  ;;  %350 = vmatprep.mubr.msk.f32.mxu1 %vm384_vm0, %v383_v34  ;;  %s385_s9 = smov [#allocation2]  }
  0x10   :  { %323 = vmatprep.subr.mxu0 %v44_v15  ;;  %v25_v22 = vld [vmem:[%s527_s2 + $0x28] sm:$0xff]  ;;  %v24_v24 = vld [vmem:[%s527_s2 + $0x20] sm:$0xff]  ;;  %v39_v25 = vld [vmem:[%s527_s2 + $0x98] sm:$0xff]  ;;  %s295_s10 = sshll.u32 %s385_s9, 4  ;;  %s296_s10 = int_to_ptr.vmem [resolvable:$true] %s295_s10 }
  0x11   :  { %324 = vmatpush3.msra.mxu0 %v28_v16  ;;  %v23_v26 = vld [vmem:[%s527_s2 + $0x18] sm:$0xff]  ;;  %v38_v27 = vld [vmem:[%s527_s2 + $0x90] sm:$0xff]  ;;  %v37_v29 = vld [vmem:[%s527_s2 + $0x88] sm:$0xff]  ;;  %s361_s11 = scalar_lea.vmem %s296_s10, 128  ;;  %p366_p1 = scmp.lt.s32.totalorder %s296_s10, %s296_s10 }
  0x12   :  { %325 = vmatprep.subr.mxu0 %v43_v17  ;;  %v22_v28 = vld [vmem:[%s527_s2 + $0x10] sm:$0xff]  ;;  %v21_v30 = vld [vmem:[%s527_s2 + $0x8] sm:$0xff]  ;;  %v36_v31 = vld [vmem:[%s527_s2 + $0x80] sm:$0xff]  ;;  %p362_p0 = scmp.ne.s32.totalorder %s296_s10, %s361_s11  ;;  %p367_p2 = scmp.lt.s32.totalorder %s361_s11, %s361_s11 }
  0x13   :  { %326 = vmatpush3.msra.mxu0 %v27_v18  ;;  %v20_v32 = vld [vmem:[%s527_s2] sm:$0xff] }
  0x14   :  { %327 = vmatprep.subr.mxu0 %v42_v19  ;;  %v18_v33 = vld [vmem:[%s525_s0] sm:$0xff]  ;;  %p368_p3 = por %p367_p2, %p366_p1 }
  0x15   :  { %328 = vmatpush3.msra.mxu0 %v26_v20  ;;  %v123_v38 = vld [vmem:[%s526_s1] sm:$0xf]  ;;  %v306_v40 = vld [vmem:[%s526_s1 + $0x4] sm:$0xf] }
  0x16   :  { %329 = vmatprep.subr.mxu0 %v41_v21  ;;  %v303_v41 = vld [vmem:[%s528_s3] ss:$0 sm:$0xff]  ;;  %p369_p4 = pnand %p368_p3, %p362_p0 }
  0x17   :  { %330 = vmatpush3.msra.mxu0 %v25_v22 }
  0x18   :  { %331 = vmatprep.subr.mxu0 %v40_v23 }
  0x19   :  { %332 = vmatpush3.msra.mxu0 %v24_v24 }
  0x1a   :  { %333 = vmatprep.subr.mxu0 %v39_v25 }
  0x1b   :  { %334 = vmatpush3.msra.mxu0 %v23_v26 }
  0x1c   :  { %335 = vmatprep.subr.mxu0 %v38_v27 }
  0x1d   :  { %336 = vmatpush3.msra.mxu0 %v22_v28 }
  0x1e   :  { %337 = vmatprep.subr.mxu0 %v37_v29 }
  0x1f   :  { %338 = vmatpush3.msra.mxu0 %v21_v30 }
  0x20   :  { %339 = vmatprep.subr.mxu0 %v36_v31 }
  0x21   :  { %340 = vmatpush3.msra.mxu0 %v20_v32 }
  0x22   :  { %117 = vmatmul.mubr.f32.vlgmr.msra.gmra.mxu0 %v18_v33 }
  0xe2   :  { %v341_v35 = vpop.f32.mrf.mxu0 }
  0xe4   :  { %v342_v36 = vpop.f32.mrf.mxu0 }
  0xe5   :  { %v343_v37 = vadd.f32 %v342_v36, %v341_v35 }
  0xe7   :  { %v212_v39 = vrot.slane %v343_v37, 4  ;;  %349 = vmatpush3.msk.msra.mxu1 %vm134_vm1, %v343_v37 }
  0xe8   :  { %351 = vmatmul.mubr.msk.f32.vlgmr.msra.gmra.mxu1 %vm130_vm2, %v123_v38  ;;  %353 = vmatprep.subr.mxu1 %v383_v34 }
  0xe9   :  { %354 = vmatpush3.msk.msra.mxu1 %vm134_vm1, %v212_v39  ;;  %355 = vmatprep.mubr.msk.f32.mxu1 %vm384_vm0, %v383_v34 }
  0xec   :  { %356 = vmatmul.mubr.msk.f32.vlgmr.msra.gmra.mxu1 %vm130_vm2, %v306_v40 }
 0x1a8   :  { %v204_v42 = vpop.f32.mrf.mxu1 }
 0x1a9   :  { %v205_v43 = vadd.f32 %v303_v41, %v204_v42 }
 0x1aa   :  { %v352_v44 = vpop.f32.mrf.mxu1 }
 0x1ab   :  { %209 = vst.msk [vmem:[#allocation2] sm:$0xf] %vm208_vm3, %v205_v43 }
 0x1ac   :  { %v284_v45 = vpop.f32.mrf.mxu1 }
 0x1ad   :  { %v285_v46 = vadd.f32 %v303_v41, %v284_v45 }
 0x1ae   :  { %v357_v47 = vpop.f32.mrf.mxu1 }
 0x1af   :  { %288 = vst.msk [vmem:[#allocation2 + $0x4] sm:$0xf] %vm208_vm3, %v285_v46 }
 0x1b0   :  { %372 = shalt.err (!%p369_p4)
}
 0x1b1   :  { %298 = dma.vmem_to_hbm [thread:$0]  %s296_s10, 128, %s529_s4, [#allocation3]  }
 0x1b2   :  { %381 = dma.done.wait [#allocation3], 128  }
 0x1b3   :  { %382 = vsyncadd [#allocation3], 4294967168 }
 0x1b4   :  { %302 = vsyncpa [#allocation3], 1 }

</bundles_post_ra>
